<compile_context>
chip_gen: v7x
topology: tpu7x:2x2x1
jax: 0.10.0
libtpu: 0.0.40
codegen_flags: <defaults>
</compile_context>

<pallas_src>
import jax
import jax.numpy as jnp
from jax.experimental import pallas as pl
from jax.experimental.pallas import tpu as pltpu


def _round_up(x, m):
    return ((x + m - 1) // m) * m


# ---------------------------------------------------------------------------
# Pass 1: conv tile (MXU matmul) + per-channel sum / sum-of-squares accumulator
# ---------------------------------------------------------------------------
def _conv_stats_kernel(p_ref, w_ref, conv_ref, stats_ref):
    # p_ref    : (block_m, K_pad)   im2col patches (compute dtype)
    # w_ref    : (K_pad, C_pad)     flattened conv weights (compute dtype)
    # conv_ref : (block_m, C_pad)   conv activation tile (compute dtype)
    # stats_ref: (2, C_pad) f32     resident accumulator: [col_sum, col_sumsq]
    mt = pl.program_id(0)

    acc = jnp.dot(p_ref[...], w_ref[...], preferred_element_type=jnp.float32)
    conv_ref[...] = acc.astype(conv_ref.dtype)

    col_sum = jnp.sum(acc, axis=0, keepdims=True)          # (1, C_pad)
    col_sumsq = jnp.sum(acc * acc, axis=0, keepdims=True)  # (1, C_pad)
    upd = jnp.concatenate([col_sum, col_sumsq], axis=0)    # (2, C_pad)

    @pl.when(mt == 0)
    def _():
        stats_ref[...] = jnp.zeros_like(stats_ref)

    stats_ref[...] += upd


# ---------------------------------------------------------------------------
# Pass 2: folded BN (one FMA) + ReLU, lane-dense output
# ---------------------------------------------------------------------------
def _bn_relu_kernel(conv_ref, ss_ref, o_ref):
    # conv_ref: (block_m, C_pad)   conv activation tile
    # ss_ref  : (2, C_pad) f32     row 0 = scale, row 1 = shift (resident)
    # o_ref   : (block_m, C_pad) f32
    y = conv_ref[...].astype(jnp.float32)
    scale = ss_ref[0:1, :]
    shift = ss_ref[1:2, :]
    o_ref[...] = jnp.maximum(y * scale + shift, jnp.float32(0.0))


def conv_block_forward(x_nchw, weight_oihw, bias, gamma, beta, *,
                       block_m=512, compute_dtype=jnp.bfloat16, eps=1e-5):
    """Forward pass equivalent to the PyTorch ConvBlock (fresh module, train mode).

    `bias` is accepted for API parity but never applied: in training-mode
    BatchNorm the conv bias is exactly cancelled by the batch-mean subtraction.
    """
    N, Cin, H, W = x_nchw.shape
    Cout, _, KH, KW = weight_oihw.shape
    assert (KH, KW) == (3, 3)
    assert block_m % 8 == 0

    M = N * H * W
    K = KH * KW * Cin
    K_pad = _round_up(K, 128)      # full-width MXU contraction (128 also ok on v6e/v7x)
    C_pad = _round_up(Cout, 128)   # lane-dense output
    M_pad = _round_up(M, block_m)
    grid_m = M_pad // block_m

    # --- glue: layout change + zero-pad + im2col (plain JAX) ---
    x = jnp.transpose(x_nchw, (0, 2, 3, 1)).astype(jnp.float32)   # NHWC
    xp = jnp.pad(x, ((0, 0), (1, 1), (1, 1), (0, 0)))             # pad=1 on H, W
    cols = [xp[:, dy:dy + H, dx:dx + W, :] for dy in range(KH) for dx in range(KW)]
    patches = jnp.concatenate(cols, axis=-1).reshape(M, K)
    patches = jnp.pad(patches, ((0, M_pad - M), (0, K_pad - K))).astype(compute_dtype)

    # (Cout, Cin, KH, KW) -> (KH, KW, Cin, Cout) -> (K, Cout); matches im2col order
    wmat = jnp.transpose(weight_oihw, (2, 3, 1, 0)).reshape(K, Cout).astype(jnp.float32)
    wmat = jnp.pad(wmat, ((0, K_pad - K), (0, C_pad - Cout))).astype(compute_dtype)

    # --- pass 1: conv matmul + batch-stat accumulation ---
    conv_out, stats = pl.pallas_call(
        _conv_stats_kernel,
        out_shape=(
            jax.ShapeDtypeStruct((M_pad, C_pad), compute_dtype),
            jax.ShapeDtypeStruct((2, C_pad), jnp.float32),
        ),
        grid=(grid_m,),
        in_specs=[
            pl.BlockSpec((block_m, K_pad), lambda mt: (mt, 0)),
            pl.BlockSpec((K_pad, C_pad), lambda mt: (0, 0)),     # weights stay resident
        ],
        out_specs=(
            pl.BlockSpec((block_m, C_pad), lambda mt: (mt, 0)),
            pl.BlockSpec((2, C_pad), lambda mt: (0, 0)),         # resident accumulator
        ),
        compiler_params=pltpu.CompilerParams(
            dimension_semantics=("arbitrary",)),                 # carried stats
    )(patches, wmat)

    # --- glue: fold BN into per-channel (scale, shift); O(Cout) work ---
    cnt = jnp.float32(M)                                  # true element count, not M_pad
    mean = stats[0] / cnt
    var = jnp.maximum(stats[1] / cnt - mean * mean, 0.0)  # biased (train-mode) variance
    inv = jax.lax.rsqrt(var + jnp.float32(eps))
    gamma_p = jnp.pad(gamma.astype(jnp.float32), (0, C_pad - Cout))
    beta_p = jnp.pad(beta.astype(jnp.float32), (0, C_pad - Cout))
    scale = gamma_p * inv
    shift = beta_p - mean * scale
    scale_shift = jnp.stack([scale, shift], axis=0)       # (2, C_pad)

    # --- pass 2: normalize + ReLU ("parallel" -> both TensorCores on v7x) ---
    out2d = pl.pallas_call(
        _bn_relu_kernel,
        out_shape=jax.ShapeDtypeStruct((M_pad, C_pad), jnp.float32),
        grid=(grid_m,),
        in_specs=[
            pl.BlockSpec((block_m, C_pad), lambda mt: (mt, 0)),
            pl.BlockSpec((2, C_pad), lambda mt: (0, 0)),
        ],
        out_specs=pl.BlockSpec((block_m, C_pad), lambda mt: (mt, 0)),
        compiler_params=pltpu.CompilerParams(
            dimension_semantics=("parallel",)),
    )(conv_out, scale_shift)

    # --- glue: strip padding, back to NCHW ---
    out = out2d[:M, :Cout].reshape(N, H, W, Cout)
    return jnp.transpose(out, (0, 3, 1, 2))


def _reference_forward(x_nchw, weight_oihw, bias, gamma, beta):
    """Pure-JAX reference (matches PyTorch ConvBlock in train mode)."""
    conv = jax.lax.conv_general_dilated(
        x_nchw.astype(jnp.float32), weight_oihw.astype(jnp.float32),
        window_strides=(1, 1), padding="SAME",
        dimension_numbers=("NCHW", "OIHW", "NCHW"))
    conv = conv + bias.reshape(1, -1, 1, 1)
    mean = jnp.mean(conv, axis=(0, 2, 3), keepdims=True)
    var = jnp.mean((conv - mean) ** 2, axis=(0, 2, 3), keepdims=True)
    y = (conv - mean) / jnp.sqrt(var + 1e-5)
    y = y * gamma.reshape(1, -1, 1, 1) + beta.reshape(1, -1, 1, 1)
    return jnp.maximum(y, 0.0)


if __name__ == "__main__":
    key = jax.random.PRNGKey(0)
    N, Cin, Cout, H, W = 2, 4, 8, 16, 16

    k_x, k_w, k_b = jax.random.split(key, 3)
    x = jax.random.normal(k_x, (N, Cin, H, W), dtype=jnp.float32)

    # Deterministic parameter init (Conv2d-style uniform fan-in scaling; BN gamma=1, beta=0)
    fan_in = Cin * 3 * 3
    bound = 1.0 / (fan_in ** 0.5)
    weight = jax.random.uniform(k_w, (Cout, Cin, 3, 3), jnp.float32, -bound, bound)
    bias = jax.random.uniform(k_b, (Cout,), jnp.float32, -bound, bound)
    gamma = jnp.ones((Cout,), jnp.float32)
    beta = jnp.zeros((Cout,), jnp.float32)

    ref = _reference_forward(x, weight, bias, gamma, beta)

    # block_m=128 at this small shape so the demo actually exercises the
    # multi-step pipeline and the cross-tile stats accumulator (default 512).

    # 1) f32 MXU path: structural correctness at tight tolerance.
    out_f32 = jax.block_until_ready(conv_block_forward(
        x, weight, bias, gamma, beta, block_m=128, compute_dtype=jnp.float32))
    assert out_f32.shape == (N, Cout, H, W)
    assert jnp.allclose(out_f32, ref, atol=1e-4, rtol=1e-4), "f32 mismatch vs reference"

    # 2) bf16 MXU path (production default: ~2x less HBM traffic, higher MXU rate).
    #    Tolerance reflects bf16's ~2^-9 relative rounding on the matmul operands
    #    and the bf16 conv intermediate; accumulation and BN stats stay f32.
    out_bf16 = jax.block_until_ready(conv_block_forward(
        x, weight, bias, gamma, beta, block_m=128, compute_dtype=jnp.bfloat16))
    assert out_bf16.shape == (N, Cout, H, W)
    assert jnp.allclose(out_bf16, ref, atol=2e-2, rtol=2e-2), "bf16 mismatch vs reference"

    print("KERNEL_OK")
</pallas_src>

<mosaic_0001>
module attributes {stable_mosaic.version = 11 : i64} {
  func.func @_conv_stats_kernel(%arg0: i32, %arg1: memref<128x128xf32, #tpu.memory_space<vmem>>, %arg2: memref<128x128xf32, #tpu.memory_space<vmem>>, %arg3: memref<128x128xf32, #tpu.memory_space<vmem>>, %arg4: memref<2x128xf32, #tpu.memory_space<vmem>>) attributes {dimension_semantics = [#tpu.dimension_semantics<arbitrary>], iteration_bounds = array<i64: 4>, scalar_prefetch = 0 : i64, scratch_operands = 0 : i64, tpu.core_type = #tpu.core_type<tc>, window_params = [{transform_indices = @transform_0, window_bounds = array<i64: 128, 128>}, {pipeline_mode = #tpu.pipeline_mode<synchronous>, transform_indices = @transform_1, window_bounds = array<i64: 128, 128>}, {transform_indices = @transform_2, window_bounds = array<i64: 128, 128>}, {pipeline_mode = #tpu.pipeline_mode<synchronous>, transform_indices = @transform_3, window_bounds = array<i64: 2, 128>}]} {
    %c0 = arith.constant 0 : index
    %c0_0 = arith.constant 0 : index
    %0 = vector.load %arg1[%c0, %c0_0] : memref<128x128xf32, #tpu.memory_space<vmem>>, vector<128x128xf32>
    %c0_1 = arith.constant 0 : index
    %c0_2 = arith.constant 0 : index
    %1 = vector.load %arg2[%c0_1, %c0_2] : memref<128x128xf32, #tpu.memory_space<vmem>>, vector<128x128xf32>
    %cst = arith.constant dense<0.000000e+00> : vector<128x128xf32>
    %2 = tpu.matmul %0, %1, %cst {dimension_numbers = #tpu.dot_dimension_numbers<[1], [0], [0], [1], [0, 0, 1, 1], [], []>} : vector<128x128xf32>, vector<128x128xf32>, vector<128x128xf32> -> vector<128x128xf32>
    %c0_3 = arith.constant 0 : index
    %c0_4 = arith.constant 0 : index
    %3 = vector.load %arg3[%c0_3, %c0_4] : memref<128x128xf32, #tpu.memory_space<vmem>>, vector<128x128xf32>
    tpu.vector_store %arg3[%c0_3, %c0_4], %2 {strides = array<i32>} : memref<128x128xf32, #tpu.memory_space<vmem>>, vector<128x128xf32>,
    %cst_5 = arith.constant dense<0.000000e+00> : vector<128xf32>
    %4 = vector.multi_reduction <add>, %2, %cst_5 [0] : vector<128x128xf32> to vector<128xf32>
    %5 = vector.shape_cast %4 : vector<128xf32> to vector<1x128xf32>
    %6 = arith.mulf %2, %2 : vector<128x128xf32>
    %cst_6 = arith.constant dense<0.000000e+00> : vector<128xf32>
    %7 = vector.multi_reduction <add>, %6, %cst_6 [0] : vector<128x128xf32> to vector<128xf32>
    %8 = vector.shape_cast %7 : vector<128xf32> to vector<1x128xf32>
    %9 = tpu.concatenate %5, %8 in 0 : vector<1x128xf32>, vector<1x128xf32> -> vector<2x128xf32>
    %c0_i32 = arith.constant 0 : i32
    %10 = arith.cmpi eq, %arg0, %c0_i32 : i32
    %11 = arith.extui %10 : i1 to i32
    %c0_i32_7 = arith.constant 0 : i32
    %12 = arith.cmpi ne, %11, %c0_i32_7 : i32
    scf.if %12 {
      %cst_12 = arith.constant 0.000000e+00 : f32
      %16 = vector.broadcast %cst_12 : f32 to vector<2x128xf32>
      %c0_13 = arith.constant 0 : index
      %c0_14 = arith.constant 0 : index
      %17 = vector.load %arg4[%c0_13, %c0_14] : memref<2x128xf32, #tpu.memory_space<vmem>>, vector<2x128xf32>
      tpu.vector_store %arg4[%c0_13, %c0_14], %16 {strides = array<i32>} : memref<2x128xf32, #tpu.memory_space<vmem>>, vector<2x128xf32>,
    } else {
    }
    %c0_8 = arith.constant 0 : index
    %c0_9 = arith.constant 0 : index
    %13 = vector.load %arg4[%c0_8, %c0_9] : memref<2x128xf32, #tpu.memory_space<vmem>>, vector<2x128xf32>
    %14 = arith.addf %13, %9 : vector<2x128xf32>
    %c0_10 = arith.constant 0 : index
    %c0_11 = arith.constant 0 : index
    %15 = vector.load %arg4[%c0_10, %c0_11] : memref<2x128xf32, #tpu.memory_space<vmem>>, vector<2x128xf32>
    tpu.vector_store %arg4[%c0_10, %c0_11], %14 {strides = array<i32>} : memref<2x128xf32, #tpu.memory_space<vmem>>, vector<2x128xf32>,
    return
  }
  func.func @transform_0(%arg0: i32) -> (i32, i32) {
    %c0_i32 = arith.constant 0 : i32
    %c0_i32_0 = arith.constant 0 : i32
    return %arg0, %c0_i32 : i32, i32
  }
  func.func @transform_1(%arg0: i32) -> (i32, i32) {
    %c0_i32 = arith.constant 0 : i32
    %c0_i32_0 = arith.constant 0 : i32
    %c0_i32_1 = arith.constant 0 : i32
    return %c0_i32, %c0_i32_0 : i32, i32
  }
  func.func @transform_2(%arg0: i32) -> (i32, i32) {
    %c0_i32 = arith.constant 0 : i32
    %c0_i32_0 = arith.constant 0 : i32
    return %arg0, %c0_i32 : i32, i32
  }
  func.func @transform_3(%arg0: i32) -> (i32, i32) {
    %c0_i32 = arith.constant 0 : i32
    %c0_i32_0 = arith.constant 0 : i32
    %c0_i32_1 = arith.constant 0 : i32
    return %c0_i32, %c0_i32_0 : i32, i32
  }
}

</mosaic_0001>

<bundles_post_ra>
// kernel: tpu_custom_call.1
= control target key start
LH: loop header
LB: loop body
LE: loop exit
PB: predicated region body
PF: predicated region fallthrough
CT: control target
= control target key end

     0   :  { %9 = vsyncpa [#allocation3], 0  ;;  %s1264_s0 = inlined_call_operand.hbm [shape: f32[512,128], index: 0, kind: input, shape index: {}]   ;;  %s1265_s1 = inlined_call_operand.hbm [shape: f32[128,128], index: 1, kind: input, shape index: {}]   ;;  %s1266_s2 = inlined_call_operand.hbm [shape: f32[512,128], index: 2, kind: output, shape index: {0}]   ;;  %s1267_s3 = inlined_call_operand.hbm [shape: f32[2,128], index: 3, kind: output, shape index: {1}]  }
   0x1   :  { %11 = vsyncpa [#allocation3 + $0x1], 0 }
   0x2   :  { %12 = vsyncpa [#allocation6], 0 }
   0x3   :  { %13 = vsyncpa [#allocation4], 0 }
   0x4   :  { %15 = vsyncpa [#allocation4 + $0x1], 0 }
   0x5   :  { %16 = vsyncpa [#allocation9], 0  ;;  %s1000_s12 = smov 0   ;;  %s1002_s13 = smov 0  }
   0x6   :  { %s1004_s14 = smov 0   ;;  %s1006_s15 = smov 0  }
   0x7 LB: > { %s1021_s16 = sadd.s32 4294967295, %s969_s15   ;;  %s585_s17 = sadd.s32 4294967294, %s969_s15   ;;  %s969_s15 = sphi %s1006_s15, %s1292_s15   ;;  %s965_s14 = sphi %s1004_s14, %s1291_s14   ;;  %s961_s13 = sphi %s1002_s13, %s1290_s13   ;;  %s957_s12 = sphi %s1000_s12, %s1289_s12  }
   0x8   : > { %p42_p0 = scmp.ne.s32.totalorder %s961_s13, %s957_s12  ;;  %p1268_p1 = scmp.eq.s32.totalorder %s1021_s16, 0 }
   0x9   : > { %p93_p3 = scmp.eq.s32.totalorder %s585_s17, 3  ;;  %p586_p5 = scmp.ge.s32.totalorder %s969_s15, 1 }
   0xa   : > { %p1030_p4 = por %p1268_p1, %p42_p0  ;;  %p121_p7 = scmp.lt.s32.totalorder %s969_s15, 5 }
   0xb   : > { %p1035_p6 = por %p93_p3, %p42_p0  ;;  %s971_s21 = smov [#allocation5]  }
   0xc   : > { %s1271_s18 = scalar_select %p1030_p4, 1, 0 }
   0xd   : > { %s1272_s19 = scalar_select %p1035_p6, 1, 0 }
   0xe   : > { %p1041_p9 = pnand %p586_p5, %p121_p7  ;;  %s133_s22 = sshll.u32 %s971_s21, 4  ;;  %s134_s22 = int_to_ptr.vmem [resolvable:$true] %s133_s22 }
   0xf   : > { %s1054_s24 = sadd.s32 1, %s969_s15   ;;  %s29_s25 = sadd.s32 1, %s965_s14 }
  0x10   : > { %s1273_s20 = scalar_select %p1041_p9, 1, 0 }
  0x11   : > { %p754_p10 = pneg %p1041_p9  ;;  %s26_s26 = ssub.s32 %s969_s15, %s1054_s24 }
  0x12   : > { %s811_s29 = scalar_lea.hbm %s1265_s1, 2048 }
  0x13   : > { %p1049_p11 = pnand %p754_p10, %p1268_p1  ;;  %p812_p12 = scmp.ne.s32.totalorder %s1265_s1, %s811_s29 }
  0x14   : > { %p818_p5 = scmp.lt.u32.totalorder %s811_s29, %s1265_s1 }
  0x15   : > { %p813_p13 = pneg %p1049_p11 }
  0x17   : > { %p814_p0 = pnand %p813_p13, %p812_p12 }
  0x19   : > { %p815_p3 = pneg %p814_p0 }
  0x1b   : > { %p820_p7 = pnand %p818_p5, %p815_p3 }
  0x1d   : > { %823 = shalt.err (!%p820_p7)
}
  0x1e   : > { %s824_s7 = scalar_lea.vmem %s134_s22, 2048  ;;  %p832_p2 = scmp.lt.s32.totalorder %s134_s22, %s134_s22 }
  0x1f   : > { %p825_p10 = scmp.ne.s32.totalorder %s134_s22, %s824_s7  ;;  %p833_p6 = scmp.lt.s32.totalorder %s824_s7, %s824_s7 }
  0x21   : > { %p827_p8 = pnand %p825_p10, %p813_p13  ;;  %p834_p4 = por %p833_p6, %p832_p2 }
  0x23   : > { %p828_p1 = pneg %p827_p8 }
  0x25   : > { %p835_p9 = pnand %p834_p4, %p828_p1 }
  0x27   : > { %838 = shalt.err (!%p835_p9)
}
  0x28   : > { %s972_s8 = smov 128   ;;  %s973_s9 = smov 8  }
  0x29   : > { %757 = dma.hbm_to_vmem [thread:$0]  (!%p1049_p11), %s1265_s1, 2048, %s134_s22, [#allocation6], %s972_s8, %s972_s8, %s973_s9  }
  0x2a   : > { %p27_p1 = scmp.eq.s32.totalorder %s26_s26, 0  ;;  %p36_p2 = scmp.ne.s32.totalorder %s965_s14, %s961_s13 }
  0x2b   : > { %p37_p4 = scmp.eq.s32.totalorder %s969_s15, 0  ;;  %p767_p6 = scmp.lt.s32.totalorder %s969_s15, 4 }
  0x2c   : > { %s1083_s17 = scalar_select %p27_p1, %s965_s14, %s29_s25  }
  0x2d   : > { %p38_p8 = por %p37_p4, %p36_p2  ;;  %p1275_p9 = scmp.eq.s32.totalorder %s1021_s16, 3 }
  0x2e   : > { %s147_s23 = sand.u32 1, %s965_s14   ;;  %s604_s27 = sshll.u32 %s969_s15, 11 }
  0x2f   : > { %p1087_p12 = por %p1275_p9, %p36_p2  ;;  %s589_s28 = sshll.u32 %s147_s23, 7 }
  0x30   : > { %s1096_s4 = scalar_lea.hbm %s1264_s0, %s604_s27  ;;  %s151_s22 = scalar_lea.vmem [#allocation2], %s589_s28 }
  0x31   : > { %s158_s25 = sshll.u32 %s151_s22, 4  ;;  %p1098_p11 = pnand %p767_p6, %p38_p8  ;;  %s1102_s25 = int_to_ptr.vmem [resolvable:$true] %s158_s25 }
  0x32   : > { %s1104_s5 = scalar_lea.sflag [#allocation3], %s147_s23  ;;  %s839_s6 = scalar_lea.hbm %s1096_s4, 2048 }
  0x33   : > { %p840_p13 = scmp.ne.s32.totalorder %s1096_s4, %s839_s6  ;;  %p841_p0 = pneg %p1098_p11 }
  0x34   : > { %s844_s11 = scalar_lea.hbm %s1264_s0, 8192  ;;  %p845_p7 = scmp.lt.u32.totalorder %s1096_s4, %s1264_s0 }
  0x35   : > { %p842_p3 = pnand %p841_p0, %p840_p13  ;;  %p846_p10 = scmp.lt.u32.totalorder %s844_s11, %s839_s6 }
  0x36   : > { %p848_p2 = scmp.lt.u32.totalorder %s839_s6, %s1096_s4 }
  0x37   : > { %p843_p5 = pneg %p842_p3  ;;  %p847_p1 = por %p846_p10, %p845_p7 }
  0x39   : > { %p849_p4 = por %p848_p2, %p847_p1 }
  0x3b   : > { %p850_p6 = pnand %p849_p4, %p843_p5 }
  0x3d   : > { %853 = shalt.err (!%p850_p6)
}
  0x3e   : > { %s854_s23 = scalar_lea.vmem %s1102_s25, 2048  ;;  %s974_s29 = smov [#allocation2]  }
  0x3f   : > { %p855_p8 = scmp.ne.s32.totalorder %s1102_s25, %s854_s23  ;;  %s859_s30 = sshll.u32 %s974_s29, 4  ;;  %s860_s30 = int_to_ptr.vmem [resolvable:$false] %s859_s30 }
  0x40   : > { %s861_s22 = scalar_lea.vmem %s860_s30, 4096  ;;  %p862_p3 = scmp.lt.s32.totalorder %s1102_s25, %s860_s30 }
  0x41   : > { %p857_p9 = pnand %p855_p8, %p841_p0  ;;  %p863_p7 = scmp.lt.s32.totalorder %s861_s22, %s854_s23 }
  0x43   : > { %p858_p13 = pneg %p857_p9  ;;  %p864_p10 = por %p863_p7, %p862_p3 }
  0x45   : > { %p865_p1 = pnand %p864_p10, %p858_p13 }
  0x47   : > { %868 = shalt.err (!%p865_p1)
}
  0x48   : > { %761 = dma.hbm_to_vmem [thread:$0]  (!%p1098_p11), %s1096_s4, 2048, %s1102_s25, %s1104_s5, %s972_s8, %s972_s8, %s973_s9  }
  0x49   : > { %p1278_p0 = scmp.ne.s32.totalorder %s1273_s20, 0 }
  0x4a   : > { %s1138_s6 = sand.u32 (!%p1278_p0), 1, %s961_s13   ;;  %p1279_p5 = scmp.ne.s32.totalorder (!%p1278_p0), %s1271_s18, 0 }
  0x4b   : > { %170 = sbr.rel (%p1278_p0) target bundleno = 434 (0x1b2), region = 28  ;;  %s593_s7 = sshll.u32 (!%p1278_p0), %s1138_s6, 7 }
  0x4c   : > { %s173_s10 = scalar_lea.sflag (!%p1278_p0), [#allocation3], %s1138_s6  ;;  %s1144_s26 = scalar_lea.vmem (!%p1278_p0), [#allocation2], %s593_s7 }
  0x52   : > { %940 = dma.done.wait (%p1279_p5), %s173_s10, 2048  }
  0x53   : > { %942 = vsyncadd (%p1279_p5), %s173_s10, 4294965248  ;;  %p1280_p11 = scmp.eq.s32.totalorder %s1021_s16, 0 }
  0x55   : > { %944 = dma.done.wait (%p1280_p11), [#allocation6], 2048   ;;  %p1281_p2 = pmov %p1280_p11 }
  0x56   : > { %v221_v0 = vld [vmem:[#allocation5] sm:$0xff]  ;;  %v222_v1 = vld [vmem:[#allocation5 + $0x8] sm:$0xff]  ;;  %v223_v2 = vld [vmem:[#allocation5 + $0x10] sm:$0xff]  ;;  %s1172_s18 = scalar_lea.vmem [#allocation7], %s593_s7  ;;  %vm456_vm0 = vcmask 1040384   ;;  %p1282_p4 = scmp.ne.s32.totalorder %s1021_s16, 0 }
  0x57   : > { %946 = vsyncadd (%p1281_p2), [#allocation6], 4294965248  ;;  %v694_v3 = vpack.c.bf16 %v222_v1, %v221_v0  ;;  %v224_v4 = vld [vmem:[#allocation5 + $0x18] sm:$0xff]  ;;  %v225_v6 = vld [vmem:[#allocation5 + $0x20] sm:$0xff] }
  0x58   : > { %v698_v5 = vpack.c.bf16 %v224_v4, %v223_v2  ;;  %v226_v7 = vld [vmem:[#allocation5 + $0x28] sm:$0xff]  ;;  %v205_v9 = vld [vmem:[%s1144_s26] sm:$0xff]  ;;  %v227_v10 = vld [vmem:[#allocation5 + $0x30] sm:$0xff] }
  0x59   : > { %695 = vmatprep.subr.bf16.mxu0 %v694_v3  ;;  %726 = vmatprep.subr.bf16.mxu1 %v694_v3  ;;  %v702_v8 = vpack.c.bf16 %v226_v7, %v225_v6  ;;  %v228_v11 = vld [vmem:[#allocation5 + $0x38] sm:$0xff]  ;;  %v213_v12 = vld [vmem:[%s1144_s26 + $0x40] sm:$0xff]  ;;  %v230_v15 = vld [vmem:[#allocation5 + $0x48] sm:$0xff] }
  0x5a   : > { %697 = vmatpush3.bf16.msra.mxu0 %v694_v3  ;;  %734 = vmatpush3.bf16.msra.mxu1 %v694_v3  ;;  %v706_v13 = vpack.c.bf16 %v228_v11, %v227_v10  ;;  %v229_v14 = vld [vmem:[#allocation5 + $0x40] sm:$0xff]  ;;  %v231_v17 = vld [vmem:[#allocation5 + $0x50] sm:$0xff]  ;;  %v232_v18 = vld [vmem:[#allocation5 + $0x58] sm:$0xff] }
  0x5b   : > { %699 = vmatprep.subr.bf16.mxu0 %v698_v5  ;;  %727 = vmatprep.subr.bf16.mxu1 %v698_v5  ;;  %v710_v16 = vpack.c.bf16 %v230_v15, %v229_v14  ;;  %v714_v19 = vpack.c.bf16 %v232_v18, %v231_v17  ;;  %v233_v20 = vld [vmem:[#allocation5 + $0x60] sm:$0xff]  ;;  %v234_v21 = vld [vmem:[#allocation5 + $0x68] sm:$0xff]  ;;  %v235_v23 = vld [vmem:[#allocation5 + $0x70] sm:$0xff] }
  0x5c   : > { %670 = vmatprep.mubr.f32.mxu0 %v205_v9  ;;  %682 = vmatprep.mubr.f32.mxu1 %v213_v12  ;;  %v718_v22 = vpack.c.bf16 %v234_v21, %v233_v20  ;;  %v236_v24 = vld [vmem:[#allocation5 + $0x78] sm:$0xff]  ;;  %v206_v26 = vld [vmem:[%s1144_s26 + $0x8] sm:$0xff]  ;;  %v207_v28 = vld [vmem:[%s1144_s26 + $0x10] sm:$0xff] }
  0x5d   : > { %v722_v25 = vpack.c.bf16 %v236_v24, %v235_v23  ;;  %v214_v27 = vld [vmem:[%s1144_s26 + $0x48] sm:$0xff]  ;;  %v215_v29 = vld [vmem:[%s1144_s26 + $0x50] sm:$0xff]  ;;  %v208_v30 = vld [vmem:[%s1144_s26 + $0x18] sm:$0xff] }
  0x5e   : > { %701 = vmatpush3.bf16.msra.mxu0 %v698_v5  ;;  %735 = vmatpush3.bf16.msra.mxu1 %v698_v5  ;;  %v216_v31 = vld [vmem:[%s1144_s26 + $0x58] sm:$0xff]  ;;  %v209_v32 = vld [vmem:[%s1144_s26 + $0x20] sm:$0xff]  ;;  %v210_v34 = vld [vmem:[%s1144_s26 + $0x28] sm:$0xff] }
  0x5f   : > { %703 = vmatprep.subr.bf16.mxu0 %v702_v8  ;;  %728 = vmatprep.subr.bf16.mxu1 %v702_v8  ;;  %v217_v33 = vld [vmem:[%s1144_s26 + $0x60] sm:$0xff]  ;;  %v218_v35 = vld [vmem:[%s1144_s26 + $0x68] sm:$0xff]  ;;  %v211_v36 = vld [vmem:[%s1144_s26 + $0x30] sm:$0xff] }
  0x60   : > { %v219_v37 = vld [vmem:[%s1144_s26 + $0x70] sm:$0xff]  ;;  %v212_v38 = vld [vmem:[%s1144_s26 + $0x38] sm:$0xff] }
  0x61   : > { %v220_v39 = vld [vmem:[%s1144_s26 + $0x78] sm:$0xff] }
  0x62   : > { %705 = vmatpush3.bf16.msra.mxu0 %v702_v8  ;;  %736 = vmatpush3.bf16.msra.mxu1 %v702_v8 }
  0x63   : > { %707 = vmatprep.subr.bf16.mxu0 %v706_v13  ;;  %729 = vmatprep.subr.bf16.mxu1 %v706_v13 }
  0x66   : > { %709 = vmatpush3.bf16.msra.mxu0 %v706_v13  ;;  %737 = vmatpush3.bf16.msra.mxu1 %v706_v13 }
  0x67   : > { %711 = vmatprep.subr.bf16.mxu0 %v710_v16  ;;  %730 = vmatprep.subr.bf16.mxu1 %v710_v16 }
  0x6a   : > { %713 = vmatpush3.bf16.msra.mxu0 %v710_v16  ;;  %738 = vmatpush3.bf16.msra.mxu1 %v710_v16 }
  0x6b   : > { %715 = vmatprep.subr.bf16.mxu0 %v714_v19  ;;  %731 = vmatprep.subr.bf16.mxu1 %v714_v19 }
  0x6e   : > { %717 = vmatpush3.bf16.msra.mxu0 %v714_v19  ;;  %739 = vmatpush3.bf16.msra.mxu1 %v714_v19 }
  0x6f   : > { %719 = vmatprep.subr.bf16.mxu0 %v718_v22  ;;  %732 = vmatprep.subr.bf16.mxu1 %v718_v22 }
  0x72   : > { %721 = vmatpush3.bf16.msra.mxu0 %v718_v22  ;;  %740 = vmatpush3.bf16.msra.mxu1 %v718_v22 }
  0x73   : > { %723 = vmatprep.subr.bf16.mxu0 %v722_v25  ;;  %733 = vmatprep.subr.bf16.mxu1 %v722_v25 }
  0x76   : > { %725 = vmatpush3.bf16.msra.mxu0 %v722_v25  ;;  %741 = vmatpush3.bf16.msra.mxu1 %v722_v25 }
  0x79   : > { %671 = vmatmul.mubr.f32.vlgmr.msra.gmra.mrb[0].mxu0 %v206_v26  ;;  %683 = vmatmul.mubr.f32.vlgmr.msra.gmra.mrb[0].mxu1 %v214_v27 }
  0x7a   : > { %673 = vmatprep.mubr.f32.mxu0 %v207_v28  ;;  %685 = vmatprep.mubr.f32.mxu1 %v215_v29 }
  0x7d   : > { %674 = vmatmul.mubr.f32.gmra.mrb[2].mxu0 %v208_v30  ;;  %686 = vmatmul.mubr.f32.gmra.mrb[2].mxu1 %v216_v31 }
  0x7e   : > { %676 = vmatprep.mubr.f32.mxu0 %v209_v32  ;;  %688 = vmatprep.mubr.f32.mxu1 %v217_v33 }
  0x81   : > { %677 = vmatmul.mubr.f32.gmra.mrb[4].mxu0 %v210_v34  ;;  %689 = vmatmul.mubr.f32.gmra.mrb[4].mxu1 %v218_v35 }
  0x82   : > { %679 = vmatprep.mubr.f32.mxu0 %v211_v36  ;;  %691 = vmatprep.mubr.f32.mxu1 %v219_v37 }
  0x85   : > { %680 = vmatmul.mubr.f32.gmra.mrb[6].mxu0 %v212_v38  ;;  %692 = vmatmul.mubr.f32.gmra.mrb[6].mxu1 %v220_v39 }
 0x14c   : > { %v672_v40 = vpop.f32.mrb[0].mxu0  ;;  %v684_v41 = vpop.f32.mrb[0].mxu1 }
 0x14d   : > { %383 = vst [vmem:[%s1172_s18 + $0x8] sm:$0xff] %v672_v40  ;;  %v420_v42 = vmul.f32 %v672_v40, %v672_v40  ;;  %v303_v43 = vpop.f32.mrb[1].mxu0  ;;  %391 = vst [vmem:[%s1172_s18 + $0x48] sm:$0xff] %v684_v41  ;;  %v343_v44 = vpop.f32.mrb[1].mxu1  ;;  %v428_v16 = vmul.f32 %v684_v41, %v684_v41 }
 0x14e   : > { %382 = vst [vmem:[%s1172_s18] sm:$0xff] %v303_v43  ;;  %v398_v45 = vadd.f32 %v672_v40, %v303_v43  ;;  %v419_v46 = vmul.f32 %v303_v43, %v303_v43  ;;  %390 = vst [vmem:[%s1172_s18 + $0x40] sm:$0xff] %v343_v44  ;;  %v427_v13 = vmul.f32 %v343_v44, %v343_v44 }
 0x150   : > { %v435_v47 = vadd.f32 %v420_v42, %v419_v46  ;;  %v675_v48 = vpop.f32.mrb[2].mxu0  ;;  %v687_v49 = vpop.f32.mrb[2].mxu1 }
 0x151   : > { %385 = vst [vmem:[%s1172_s18 + $0x18] sm:$0xff] %v675_v48  ;;  %v313_v50 = vpop.f32.mrb[3].mxu0  ;;  %393 = vst [vmem:[%s1172_s18 + $0x58] sm:$0xff] %v687_v49  ;;  %v353_v51 = vpop.f32.mrb[3].mxu1  ;;  %v422_v54 = vmul.f32 %v675_v48, %v675_v48  ;;  %v430_v22 = vmul.f32 %v687_v49, %v687_v49 }
 0x152   : > { %384 = vst [vmem:[%s1172_s18 + $0x10] sm:$0xff] %v313_v50  ;;  %v399_v52 = vadd.f32 %v398_v45, %v313_v50  ;;  %v421_v53 = vmul.f32 %v313_v50, %v313_v50  ;;  %392 = vst [vmem:[%s1172_s18 + $0x50] sm:$0xff] %v353_v51  ;;  %v429_v19 = vmul.f32 %v353_v51, %v353_v51 }
 0x154   : > { %v436_v55 = vadd.f32 %v435_v47, %v421_v53  ;;  %v678_v56 = vpop.f32.mrb[4].mxu0  ;;  %v400_v57 = vadd.f32 %v675_v48, %v399_v52  ;;  %v690_v58 = vpop.f32.mrb[4].mxu1 }
 0x155   : > { %387 = vst [vmem:[%s1172_s18 + $0x28] sm:$0xff] %v678_v56  ;;  %v323_v59 = vpop.f32.mrb[5].mxu0  ;;  %395 = vst [vmem:[%s1172_s18 + $0x68] sm:$0xff] %v690_v58  ;;  %v363_v60 = vpop.f32.mrb[5].mxu1  ;;  %v424_v0 = vmul.f32 %v678_v56, %v678_v56  ;;  %v432_v28 = vmul.f32 %v690_v58, %v690_v58 }
 0x156   : > { %386 = vst [vmem:[%s1172_s18 + $0x20] sm:$0xff] %v323_v59  ;;  %v401_v61 = vadd.f32 %v400_v57, %v323_v59  ;;  %v423_v62 = vmul.f32 %v323_v59, %v323_v59  ;;  %v437_v63 = vadd.f32 %v436_v55, %v422_v54  ;;  %394 = vst [vmem:[%s1172_s18 + $0x60] sm:$0xff] %v363_v60 }
 0x157   : > { %v431_v25 = vmul.f32 %v363_v60, %v363_v60 }
 0x158   : > { %v438_v1 = vadd.f32 %v437_v63, %v423_v62  ;;  %v681_v2 = vpop.f32.mrb[6].mxu0  ;;  %v402_v3 = vadd.f32 %v678_v56, %v401_v61  ;;  %v693_v4 = vpop.f32.mrb[6].mxu1 }
 0x159   : > { %389 = vst [vmem:[%s1172_s18 + $0x38] sm:$0xff] %v681_v2  ;;  %v333_v5 = vpop.f32.mrb[7].mxu0  ;;  %397 = vst [vmem:[%s1172_s18 + $0x78] sm:$0xff] %v693_v4  ;;  %v373_v6 = vpop.f32.mrb[7].mxu1  ;;  %v426_v10 = vmul.f32 %v681_v2, %v681_v2  ;;  %v434_v34 = vmul.f32 %v693_v4, %v693_v4 }
 0x15a   : > { %388 = vst [vmem:[%s1172_s18 + $0x30] sm:$0xff] %v333_v5  ;;  %v403_v7 = vadd.f32 %v402_v3, %v333_v5  ;;  %v425_v8 = vmul.f32 %v333_v5, %v333_v5  ;;  %v439_v9 = vadd.f32 %v438_v1, %v424_v0  ;;  %396 = vst [vmem:[%s1172_s18 + $0x70] sm:$0xff] %v373_v6 }
 0x15b   : > { %v433_v31 = vmul.f32 %v373_v6, %v373_v6 }
 0x15c   : > { %v404_v11 = vadd.f32 %v681_v2, %v403_v7  ;;  %v440_v12 = vadd.f32 %v439_v9, %v425_v8 }
 0x15e   : > { %v441_v14 = vadd.f32 %v440_v12, %v426_v10  ;;  %v405_v15 = vadd.f32 %v404_v11, %v343_v44 }
 0x160   : > { %v442_v17 = vadd.f32 %v441_v14, %v427_v13  ;;  %v406_v18 = vadd.f32 %v684_v41, %v405_v15 }
 0x162   : > { %v407_v20 = vadd.f32 %v406_v18, %v353_v51  ;;  %v443_v21 = vadd.f32 %v442_v17, %v428_v16  ;;  %v975_v51 = vmov (!%p1282_p4), 0.0  }
 0x163   : > { %462 = vst [vmem:[#allocation8] sm:$0x3] (!%p1282_p4), %v975_v51 }
 0x164   : > { %v444_v23 = vadd.f32 %v443_v21, %v429_v19  ;;  %v408_v24 = vadd.f32 %v687_v49, %v407_v20 }
 0x166   : > { %v409_v26 = vadd.f32 %v408_v24, %v363_v60  ;;  %v445_v27 = vadd.f32 %v444_v23, %v430_v22 }
 0x168   : > { %v446_v29 = vadd.f32 %v445_v27, %v431_v25  ;;  %v410_v30 = vadd.f32 %v690_v58, %v409_v26 }
 0x16a   : > { %v411_v32 = vadd.f32 %v410_v30, %v373_v6  ;;  %v447_v33 = vadd.f32 %v446_v29, %v432_v28 }
 0x16c   : > { %v412_v35 = vadd.f32 %v693_v4, %v411_v32  ;;  %v448_v36 = vadd.f32 %v447_v33, %v433_v31 }
 0x16e   : > { %v413_v37 = vrot.slane %v412_v35, 4  ;;  %v449_v38 = vadd.f32 %v448_v36, %v434_v34 }
 0x170   : > { %v414_v39 = vadd.f32 %v413_v37, %v412_v35  ;;  %v450_v40 = vrot.slane %v449_v38, 4 }
 0x172   : > { %v415_v41 = vrot.slane %v414_v39, 2  ;;  %v451_v42 = vadd.f32 %v450_v40, %v449_v38 }
 0x174   : > { %v416_v43 = vadd.f32 %v415_v41, %v414_v39  ;;  %v452_v44 = vrot.slane %v451_v42, 2 }
 0x176   : > { %v417_v45 = vrot.slane %v416_v43, 1  ;;  %v453_v46 = vadd.f32 %v452_v44, %v451_v42  ;;  %461 = sbr.rel (%p1282_p4) target bundleno = 381 (0x17d), region = 40 }
 0x178   : > { %v454_v47 = vrot.slane %v453_v46, 1  ;;  %v418_v48 = vadd.f32 %v417_v45, %v416_v43 }
 0x17a   : > { %v455_v49 = vadd.f32 %v454_v47, %v453_v46 }
 0x17c   : > { %v457_v50 = vsel %vm456_vm0, %v418_v48, %v455_v49 }
 0x17d PF: > { %v463_v52 = vld [vmem:[#allocation8] sm:$0x3]  ;;  %s605_s20 = sshll.u32 %s1021_s16, 11  ;;  %s480_s25 = sshll.u32 %s1172_s18, 4  ;;  %s1199_s25 = int_to_ptr.vmem [resolvable:$true] %s480_s25 }
 0x17e   : > { %v464_v53 = vadd.f32 %v463_v52, %v457_v50  ;;  %s1196_s4 = scalar_lea.hbm %s1266_s2, %s605_s20  ;;  %s467_s5 = scalar_lea.sflag [#allocation4], %s1138_s6 }
 0x17f   : > { %s869_s11 = scalar_lea.vmem %s1199_s25, 2048  ;;  %s976_s27 = smov [#allocation7]  }
 0x180   : > { %465 = vst [vmem:[#allocation8] sm:$0x3] %v464_v53  ;;  %p870_p6 = scmp.ne.s32.totalorder %s1199_s25, %s869_s11  ;;  %s873_s28 = sshll.u32 %s976_s27, 4  ;;  %s874_s28 = int_to_ptr.vmem [resolvable:$false] %s873_s28 }
 0x181   : > { %s875_s23 = scalar_lea.vmem %s874_s28, 4096  ;;  %p876_p13 = scmp.lt.s32.totalorder %s1199_s25, %s874_s28 }
 0x182   : > { %p871_p8 = pnand %p870_p6, %p1087_p12  ;;  %p877_p3 = scmp.lt.s32.totalorder %s875_s23, %s869_s11 }
 0x184   : > { %p872_p9 = pneg %p871_p8  ;;  %p878_p7 = por %p877_p3, %p876_p13 }
 0x186   : > { %p879_p10 = pnand %p878_p7, %p872_p9 }
 0x188   : > { %882 = shalt.err (!%p879_p10)
}
 0x189   : > { %s883_s29 = scalar_lea.hbm %s1196_s4, 2048  ;;  %s887_s7 = scalar_lea.hbm %s1266_s2, 8192 }
 0x18a   : > { %p884_p1 = scmp.ne.s32.totalorder %s1196_s4, %s883_s29  ;;  %p888_p11 = scmp.lt.u32.totalorder %s1196_s4, %s1266_s2 }
 0x18b   : > { %p889_p2 = scmp.lt.u32.totalorder %s887_s7, %s883_s29  ;;  %p891_p6 = scmp.lt.u32.totalorder %s883_s29, %s1196_s4 }
 0x18c   : > { %p885_p0 = pnand %p884_p1, %p1087_p12 }
 0x18d   : > { %p890_p4 = por %p889_p2, %p888_p11 }
 0x18e   : > { %p886_p5 = pneg %p885_p0 }
 0x18f   : > { %p892_p8 = por %p891_p6, %p890_p4 }
 0x191   : > { %p893_p9 = pnand %p892_p8, %p886_p5 }
 0x193   : > { %896 = shalt.err (!%p893_p9)
}
 0x194   : > { %s977_s18 = smov 128   ;;  %s978_s20 = smov 8  }
 0x195   : > { %748 = dma.vmem_to_hbm [thread:$0]  (%p1087_p12), %s1199_s25, 2048, %s1196_s4, %s467_s5, %s977_s18, %s977_s18, %s978_s20  }
 0x196   : > { %s979_s8 = smov [#allocation8]   ;;  %p1283_p3 = scmp.eq.s32.totalorder %s1021_s16, 3 }
 0x197   : > { %s494_s9 = sshll.u32 %s979_s8, 4  ;;  %s495_s9 = int_to_ptr.vmem [resolvable:$true] %s494_s9 }
 0x198   : > { %s897_s11 = scalar_lea.vmem %s495_s9, 32  ;;  %p904_p1 = scmp.lt.s32.totalorder %s495_s9, %s495_s9 }
 0x199   : > { %p898_p13 = scmp.ne.s32.totalorder %s495_s9, %s897_s11  ;;  %p905_p0 = scmp.lt.s32.totalorder %s897_s11, %s897_s11 }
 0x19b   : > { %p899_p7 = pnand %p898_p13, %p1283_p3  ;;  %p906_p5 = por %p905_p0, %p904_p1 }
 0x19d   : > { %p900_p10 = pneg %p899_p7 }
 0x19f   : > { %p907_p11 = pnand %p906_p5, %p900_p10 }
 0x1a1   : > { %910 = shalt.err (!%p907_p11)
}
 0x1a2   : > { %s911_s21 = scalar_lea.hbm %s1267_s3, 32  ;;  %p1284_p2 = pmov %p1283_p3 }
 0x1a3   : > { %p912_p12 = scmp.ne.s32.totalorder %s1267_s3, %s911_s21  ;;  %p917_p8 = scmp.lt.u32.totalorder %s911_s21, %s1267_s3 }
 0x1a5   : > { %p913_p4 = pnand %p912_p12, %p1284_p2 }
 0x1a7   : > { %p914_p6 = pneg %p913_p4 }
 0x1a9   : > { %p919_p9 = pnand %p917_p8, %p914_p6 }
 0x1ab   : > { %922 = shalt.err (!%p919_p9)
}
 0x1ac   : > { %p1285_p13 = pmov %p1284_p2  ;;  %p1286_p3 = pmov %p1284_p2 }
 0x1ae   : > { %750 = dma.vmem_to_hbm [thread:$0]  (%p1285_p13), %s495_s9, 32, %s1267_s3, [#allocation9]  }
 0x1af   : > { %948 = dma.done.wait (%p1286_p3), [#allocation9], 32   ;;  %p1287_p7 = pmov %p1284_p2 }
 0x1b1   : > { %950 = vsyncadd (%p1287_p7), [#allocation9], 4294967264 }
 0x1b2 PF: > { %p771_p10 = scmp.ge.s32.totalorder %s969_s15, 2  ;;  %s510_s30 = sand.u32 1, %s957_s12  }
 0x1b3   : > { %p1288_p1 = scmp.ne.s32.totalorder %s1272_s19, 0  ;;  %s511_s22 = scalar_lea.sflag [#allocation4], %s510_s30 }
 0x1b5   : > { %p763_p0 = pnand %p771_p10, %p1288_p1 }
 0x1b7   : > { %952 = dma.done.wait (!%p763_p0), %s511_s22, 2048  }
 0x1b8   : > { %954 = vsyncadd (!%p763_p0), %s511_s22, 4294965248  ;;  %p19_p5 = scmp.ge.s32.totalorder %s1054_s24, 6   ;;  %s1289_s12 = smov %s961_s13 }
 0x1b9   : > { %s1290_s13 = smov %s965_s14  ;;  %s1291_s14 = smov %s1083_s17 }
 0x1ba   : > { %s1292_s15 = smov %s1054_s24  ;;  %21 = sbr.rel (!%p19_p5) target bundleno = 7 (0x7), region = 89 }
 0x1c1   :  { %516 = vsyncpa [#allocation3], 1 }
 0x1c2   :  { %518 = vsyncpa [#allocation3 + $0x1], 1 }
 0x1c3   :  { %519 = vsyncpa [#allocation6], 1 }
 0x1c4   :  { %520 = vsyncpa [#allocation4], 1 }
 0x1c5   :  { %522 = vsyncpa [#allocation4 + $0x1], 1 }
 0x1c6   :  { %523 = vsyncpa [#allocation9], 1 }

</bundles_post_ra>
